<compile_context>
chip_gen: v7x
topology: tpu7x:2x2x1
jax: 0.10.0
libtpu: 0.0.40
codegen_flags: <defaults>
</compile_context>

<pallas_src>
import functools

import jax
import jax.numpy as jnp
from jax.experimental import pallas as pl
from jax.experimental.pallas import tpu as pltpu

HIDDEN = 16  # hidden width of the PyTorch module


def _round_up(n, m):
    return (n + m - 1) // m * m


def _choose_tiling(batch, target_tile):
    """Pick (padded_batch, tile_b).

    padded_batch is a small multiple of 128 (256 when we want >=2 grid steps),
    tile_b is a multiple of 128 that divides padded_batch, is <= target_tile,
    and gives >=2 grid steps whenever the batch allows it (so the two v7x
    TensorCores both get work); padding waste is bounded by the 128/256 pad
    unit instead of a full tile.
    """
    batch = max(batch, 1)
    pad_unit = 256 if batch >= 256 else 128
    padded = _round_up(batch, pad_unit)
    min_steps = 2 if padded >= 256 else 1
    tile = 128
    for k in range(min(target_tile, padded) // 128, 0, -1):
        tb = 128 * k
        if padded % tb == 0 and padded // tb >= min_steps:
            tile = tb
            break
    return padded, tile


def mlp_kernel(x_ref, w1_ref, b1_ref, w2_ref, b2_ref, w3_ref, b3_ref,
               w4_ref, b4_ref, out_ref, *, output_size, precision):
    """Fused 4-layer MLP on one batch tile.

    x_ref:   (tile_b, input_size)  natural layout straight from HBM
    w*_ref:  PyTorch (out_features, in_features) layout, exact shapes
             (w4/b4 zero-padded to 8 out-features); b*_ref: (out_features, 1) f32
    out_ref: (tile_b, output_size) natural layout
    """
    cd = w1_ref.dtype  # dtype fed to the MXU (f32, or bf16 transport)

    # Layer 1: contract the feature axes of w1 (16, in) and x (tile_b, in)
    # directly (rhs-transposed dot, same pattern as q @ k.T).  The activation
    # comes out lane-dense with the batch on the 128-wide lane axis.
    h = jax.lax.dot_general(w1_ref[...], x_ref[...], (((1,), (1,)), ((), ())),
                            precision=precision,
                            preferred_element_type=jnp.float32)
    h = jnp.maximum(h + b1_ref[...], 0.0).astype(cd)            # (16, tile_b)

    # Layers 2 & 3: standard (16,16) @ (16, tile_b), lane-dense throughout.
    h = jax.lax.dot_general(w2_ref[...], h, (((1,), (0,)), ((), ())),
                            precision=precision,
                            preferred_element_type=jnp.float32)
    h = jnp.maximum(h + b2_ref[...], 0.0).astype(cd)

    h = jax.lax.dot_general(w3_ref[...], h, (((1,), (0,)), ((), ())),
                            precision=precision,
                            preferred_element_type=jnp.float32)
    h = jnp.maximum(h + b3_ref[...], 0.0).astype(cd)

    # Layer 4 (out-features zero-padded to one full sublane group of 8).
    y = jax.lax.dot_general(w4_ref[...], h, (((1,), (0,)), ((), ())),
                            precision=precision,
                            preferred_element_type=jnp.float32)
    y = y + b4_ref[...]                                          # (8, tile_b) f32

    # Small XLU transpose back to the natural (batch, out) layout; the source
    # is (8, multiple-of-128) so this is a clean vreg-tile transpose and the
    # XLU is otherwise idle.  The HBM writeback stays fully contiguous.
    y = y.T                                                      # (tile_b, 8)
    out_ref[...] = y[:, :output_size].astype(out_ref.dtype)


def fully_connected_forward(x, params, *, target_tile=4096, transport_dtype=None,
                            precision=None):
    """Run the fused MLP Pallas kernel.

    x: (batch, input_size) float32, natural layout (no host-side transpose).
    params: dict with w1..w4 as (out_features, in_features) and b1..b4 as
            (out_features,) -- the native PyTorch nn.Linear layout.
    transport_dtype: optionally jnp.bfloat16 to halve x/weight HBM bytes
            (useful on bandwidth-poor v5e); accumulation stays f32 in-kernel
            and the bf16 operands are fed to the MXU without an up-cast.
    precision: optional lax.Precision for the in-kernel dots.  The default
            f32 path already matches the f32 reference to ~1e-6 here (tiny
            contraction dims); use transport_dtype=bfloat16 to deliberately
            trade accuracy for bandwidth instead.
    """
    batch, input_size = x.shape
    output_size = params["w4"].shape[0]
    out_dtype = x.dtype

    compute_dtype = (jnp.dtype(transport_dtype) if transport_dtype is not None
                     else jnp.dtype(jnp.float32))

    padded_batch, tile_b = _choose_tiling(batch, target_tile)
    x_in = x.astype(compute_dtype)
    if padded_batch != batch:
        x_in = jnp.pad(x_in, ((0, padded_batch - batch), (0, 0)))

    # Weights at exact shapes (PyTorch (out, in) layout); biases as (out, 1)
    # f32 columns so they broadcast along the lane axis inside the kernel.
    # The last layer is zero-padded to 8 out-features (one sublane group).
    out_pad = _round_up(output_size, 8)
    w1 = params["w1"].astype(compute_dtype)
    w2 = params["w2"].astype(compute_dtype)
    w3 = params["w3"].astype(compute_dtype)
    w4 = jnp.zeros((out_pad, params["w4"].shape[1]), compute_dtype)
    w4 = w4.at[:output_size, :].set(params["w4"].astype(compute_dtype))
    b1 = params["b1"].astype(jnp.float32).reshape(-1, 1)
    b2 = params["b2"].astype(jnp.float32).reshape(-1, 1)
    b3 = params["b3"].astype(jnp.float32).reshape(-1, 1)
    b4 = jnp.zeros((out_pad, 1), jnp.float32)
    b4 = b4.at[:output_size, 0].set(params["b4"].astype(jnp.float32))

    grid = (padded_batch // tile_b,)

    flops = 2 * padded_batch * (input_size * HIDDEN + 2 * HIDDEN * HIDDEN
                                + HIDDEN * out_pad)
    bytes_accessed = int(
        x_in.size * x_in.dtype.itemsize
        + sum(a.size * a.dtype.itemsize for a in (w1, w2, w3, w4, b1, b2, b3, b4))
        + padded_batch * output_size * jnp.dtype(out_dtype).itemsize)
    cost = pl.CostEstimate(flops=int(flops), transcendentals=0,
                           bytes_accessed=bytes_accessed)

    kernel = functools.partial(mlp_kernel, output_size=output_size,
                               precision=precision)

    const = lambda i: (0, 0)  # params: constant block index -> VMEM-resident
    y = pl.pallas_call(
        kernel,
        out_shape=jax.ShapeDtypeStruct((padded_batch, output_size), out_dtype),
        grid=grid,
        in_specs=[
            pl.BlockSpec((tile_b, input_size), lambda i: (i, 0)),
            pl.BlockSpec(w1.shape, const), pl.BlockSpec(b1.shape, const),
            pl.BlockSpec(w2.shape, const), pl.BlockSpec(b2.shape, const),
            pl.BlockSpec(w3.shape, const), pl.BlockSpec(b3.shape, const),
            pl.BlockSpec(w4.shape, const), pl.BlockSpec(b4.shape, const),
        ],
        out_specs=pl.BlockSpec((tile_b, output_size), lambda i: (i, 0)),
        compiler_params=pltpu.CompilerParams(
            dimension_semantics=("parallel",)),   # megacore sharding on v7x
        cost_estimate=cost,
    )(x_in, w1, b1, w2, b2, w3, b3, w4, b4)

    return y[:batch] if padded_batch != batch else y


def init_params(key, input_size, output_size):
    """Deterministic init matching PyTorch nn.Linear default (uniform +-1/sqrt(fan_in)).

    Weights stored PyTorch-style: (out_features, in_features); biases (out_features,).
    """
    dims = [(input_size, HIDDEN), (HIDDEN, HIDDEN),
            (HIDDEN, HIDDEN), (HIDDEN, output_size)]
    params = {}
    for i, (fan_in, fan_out) in enumerate(dims, start=1):
        key, kw, kb = jax.random.split(key, 3)
        bound = 1.0 / (fan_in ** 0.5)
        params[f"w{i}"] = jax.random.uniform(
            kw, (fan_out, fan_in), jnp.float32, -bound, bound)
        params[f"b{i}"] = jax.random.uniform(
            kb, (fan_out,), jnp.float32, -bound, bound)
    return params


def reference_forward(x, params):
    h = x
    for i in range(1, 4):
        h = jnp.maximum(h @ params[f"w{i}"].T + params[f"b{i}"], 0.0)
    return h @ params["w4"].T + params["b4"]


if __name__ == "__main__":
    input_size = 8    # e.g. a small game-state feature vector
    output_size = 4   # e.g. Q-values for 4 actions

    key = jax.random.PRNGKey(0)
    key, kx1, kx2 = jax.random.split(key, 3)
    params = init_params(key, input_size, output_size)

    # Small demo batch (single 128-row tile after padding).
    x_small = jax.random.normal(kx1, (2, input_size), jnp.float32)
    y_small = jax.block_until_ready(fully_connected_forward(x_small, params))
    assert y_small.shape == (2, output_size)
    assert jnp.allclose(y_small, reference_forward(x_small, params),
                        atol=1e-4, rtol=1e-4), "mismatch vs reference (small batch)"

    # Larger batch exercising the multi-step grid + batch-padding path.
    x_big = jax.random.normal(kx2, (640, input_size), jnp.float32)
    y_big = jax.block_until_ready(fully_connected_forward(x_big, params))
    assert y_big.shape == (640, output_size)
    assert jnp.allclose(y_big, reference_forward(x_big, params),
                        atol=1e-4, rtol=1e-4), "mismatch vs reference (big batch)"

    # TODO(synk): training utilities (RMSprop optimizer, MSELoss, DataLoader loop)
    # from the PyTorch module are host-side training code, not kernel work.
    print("KERNEL_OK")
</pallas_src>

<mosaic_0001>
module attributes {stable_mosaic.version = 11 : i64} {
  func.func @mlp_kernel(%arg0: i32, %arg1: memref<128x8xf32, #tpu.memory_space<vmem>>, %arg2: memref<16x8xf32, #tpu.memory_space<vmem>>, %arg3: memref<16x1xf32, #tpu.memory_space<vmem>>, %arg4: memref<16x16xf32, #tpu.memory_space<vmem>>, %arg5: memref<16x1xf32, #tpu.memory_space<vmem>>, %arg6: memref<16x16xf32, #tpu.memory_space<vmem>>, %arg7: memref<16x1xf32, #tpu.memory_space<vmem>>, %arg8: memref<8x16xf32, #tpu.memory_space<vmem>>, %arg9: memref<8x1xf32, #tpu.memory_space<vmem>>, %arg10: memref<128x4xf32, #tpu.memory_space<vmem>>) attributes {dimension_semantics = [#tpu.dimension_semantics<parallel>], iteration_bounds = array<i64: 1>, scalar_prefetch = 0 : i64, scratch_operands = 0 : i64, tpu.core_type = #tpu.core_type<tc>, window_params = [{transform_indices = @transform_0, window_bounds = array<i64: 128, 8>}, {pipeline_mode = #tpu.pipeline_mode<synchronous>, transform_indices = @transform_1, window_bounds = array<i64: 16, 8>}, {pipeline_mode = #tpu.pipeline_mode<synchronous>, transform_indices = @transform_2, window_bounds = array<i64: 16, 1>}, {pipeline_mode = #tpu.pipeline_mode<synchronous>, transform_indices = @transform_3, window_bounds = array<i64: 16, 16>}, {pipeline_mode = #tpu.pipeline_mode<synchronous>, transform_indices = @transform_4, window_bounds = array<i64: 16, 1>}, {pipeline_mode = #tpu.pipeline_mode<synchronous>, transform_indices = @transform_5, window_bounds = array<i64: 16, 16>}, {pipeline_mode = #tpu.pipeline_mode<synchronous>, transform_indices = @transform_6, window_bounds = array<i64: 16, 1>}, {pipeline_mode = #tpu.pipeline_mode<synchronous>, transform_indices = @transform_7, window_bounds = array<i64: 8, 16>}, {pipeline_mode = #tpu.pipeline_mode<synchronous>, transform_indices = @transform_8, window_bounds = array<i64: 8, 1>}, {transform_indices = @transform_9, window_bounds = array<i64: 128, 4>}]} {
    %c0 = arith.constant 0 : index
    %c0_0 = arith.constant 0 : index
    %0 = vector.load %arg2[%c0, %c0_0] : memref<16x8xf32, #tpu.memory_space<vmem>>, vector<16x8xf32>
    %c0_1 = arith.constant 0 : index
    %c0_2 = arith.constant 0 : index
    %1 = vector.load %arg1[%c0_1, %c0_2] : memref<128x8xf32, #tpu.memory_space<vmem>>, vector<128x8xf32>
    %cst = arith.constant dense<0.000000e+00> : vector<16x128xf32>
    %2 = tpu.matmul %0, %1, %cst {dimension_numbers = #tpu.dot_dimension_numbers<[1], [1], [0], [0], [0, 0, 1, 0], [], []>} : vector<16x8xf32>, vector<128x8xf32>, vector<16x128xf32> -> vector<16x128xf32>
    %c0_3 = arith.constant 0 : index
    %c0_4 = arith.constant 0 : index
    %3 = vector.load %arg3[%c0_3, %c0_4] : memref<16x1xf32, #tpu.memory_space<vmem>>, vector<16x1xf32>
    %4 = vector.broadcast %3 : vector<16x1xf32> to vector<16x128xf32>
    %5 = arith.addf %2, %4 : vector<16x128xf32>
    %cst_5 = arith.constant 0.000000e+00 : f32
    %6 = vector.broadcast %cst_5 : f32 to vector<16x128xf32>
    %7 = arith.maximumf %5, %6 : vector<16x128xf32>
    %c0_6 = arith.constant 0 : index
    %c0_7 = arith.constant 0 : index
    %8 = vector.load %arg4[%c0_6, %c0_7] : memref<16x16xf32, #tpu.memory_space<vmem>>, vector<16x16xf32>
    %cst_8 = arith.constant dense<0.000000e+00> : vector<16x128xf32>
    %9 = tpu.matmul %8, %7, %cst_8 {dimension_numbers = #tpu.dot_dimension_numbers<[1], [0], [0], [1], [0, 0, 1, 1], [], []>} : vector<16x16xf32>, vector<16x128xf32>, vector<16x128xf32> -> vector<16x128xf32>
    %c0_9 = arith.constant 0 : index
    %c0_10 = arith.constant 0 : index
    %10 = vector.load %arg5[%c0_9, %c0_10] : memref<16x1xf32, #tpu.memory_space<vmem>>, vector<16x1xf32>
    %11 = vector.broadcast %10 : vector<16x1xf32> to vector<16x128xf32>
    %12 = arith.addf %9, %11 : vector<16x128xf32>
    %cst_11 = arith.constant 0.000000e+00 : f32
    %13 = vector.broadcast %cst_11 : f32 to vector<16x128xf32>
    %14 = arith.maximumf %12, %13 : vector<16x128xf32>
    %c0_12 = arith.constant 0 : index
    %c0_13 = arith.constant 0 : index
    %15 = vector.load %arg6[%c0_12, %c0_13] : memref<16x16xf32, #tpu.memory_space<vmem>>, vector<16x16xf32>
    %cst_14 = arith.constant dense<0.000000e+00> : vector<16x128xf32>
    %16 = tpu.matmul %15, %14, %cst_14 {dimension_numbers = #tpu.dot_dimension_numbers<[1], [0], [0], [1], [0, 0, 1, 1], [], []>} : vector<16x16xf32>, vector<16x128xf32>, vector<16x128xf32> -> vector<16x128xf32>
    %c0_15 = arith.constant 0 : index
    %c0_16 = arith.constant 0 : index
    %17 = vector.load %arg7[%c0_15, %c0_16] : memref<16x1xf32, #tpu.memory_space<vmem>>, vector<16x1xf32>
    %18 = vector.broadcast %17 : vector<16x1xf32> to vector<16x128xf32>
    %19 = arith.addf %16, %18 : vector<16x128xf32>
    %cst_17 = arith.constant 0.000000e+00 : f32
    %20 = vector.broadcast %cst_17 : f32 to vector<16x128xf32>
    %21 = arith.maximumf %19, %20 : vector<16x128xf32>
    %c0_18 = arith.constant 0 : index
    %c0_19 = arith.constant 0 : index
    %22 = vector.load %arg8[%c0_18, %c0_19] : memref<8x16xf32, #tpu.memory_space<vmem>>, vector<8x16xf32>
    %cst_20 = arith.constant dense<0.000000e+00> : vector<8x128xf32>
    %23 = tpu.matmul %22, %21, %cst_20 {dimension_numbers = #tpu.dot_dimension_numbers<[1], [0], [0], [1], [0, 0, 1, 1], [], []>} : vector<8x16xf32>, vector<16x128xf32>, vector<8x128xf32> -> vector<8x128xf32>
    %c0_21 = arith.constant 0 : index
    %c0_22 = arith.constant 0 : index
    %24 = vector.load %arg9[%c0_21, %c0_22] : memref<8x1xf32, #tpu.memory_space<vmem>>, vector<8x1xf32>
    %25 = vector.broadcast %24 : vector<8x1xf32> to vector<8x128xf32>
    %26 = arith.addf %23, %25 : vector<8x128xf32>
    %27 = tpu.transpose %26, [1, 0] : vector<8x128xf32> -> vector<128x8xf32>
    %28 = vector.extract_strided_slice %27 {offsets = [0, 0], sizes = [128, 4], strides = [1, 1]} : vector<128x8xf32> to vector<128x4xf32>
    %c0_23 = arith.constant 0 : index
    %c0_24 = arith.constant 0 : index
    %29 = vector.load %arg10[%c0_23, %c0_24] : memref<128x4xf32, #tpu.memory_space<vmem>>, vector<128x4xf32>
    tpu.vector_store %arg10[%c0_23, %c0_24], %28 {strides = array<i32>} : memref<128x4xf32, #tpu.memory_space<vmem>>, vector<128x4xf32>,
    return
  }
  func.func @transform_0(%arg0: i32) -> (i32, i32) {
    %c0_i32 = arith.constant 0 : i32
    %c0_i32_0 = arith.constant 0 : i32
    return %arg0, %c0_i32 : i32, i32
  }
  func.func @transform_1(%arg0: i32) -> (i32, i32) {
    %c0_i32 = arith.constant 0 : i32
    %c0_i32_0 = arith.constant 0 : i32
    %c0_i32_1 = arith.constant 0 : i32
    return %c0_i32, %c0_i32_0 : i32, i32
  }
  func.func @transform_2(%arg0: i32) -> (i32, i32) {
    %c0_i32 = arith.constant 0 : i32
    %c0_i32_0 = arith.constant 0 : i32
    %c0_i32_1 = arith.constant 0 : i32
    return %c0_i32, %c0_i32_0 : i32, i32
  }
  func.func @transform_3(%arg0: i32) -> (i32, i32) {
    %c0_i32 = arith.constant 0 : i32
    %c0_i32_0 = arith.constant 0 : i32
    %c0_i32_1 = arith.constant 0 : i32
    return %c0_i32, %c0_i32_0 : i32, i32
  }
  func.func @transform_4(%arg0: i32) -> (i32, i32) {
    %c0_i32 = arith.constant 0 : i32
    %c0_i32_0 = arith.constant 0 : i32
    %c0_i32_1 = arith.constant 0 : i32
    return %c0_i32, %c0_i32_0 : i32, i32
  }
  func.func @transform_5(%arg0: i32) -> (i32, i32) {
    %c0_i32 = arith.constant 0 : i32
    %c0_i32_0 = arith.constant 0 : i32
    %c0_i32_1 = arith.constant 0 : i32
    return %c0_i32, %c0_i32_0 : i32, i32
  }
  func.func @transform_6(%arg0: i32) -> (i32, i32) {
    %c0_i32 = arith.constant 0 : i32
    %c0_i32_0 = arith.constant 0 : i32
    %c0_i32_1 = arith.constant 0 : i32
    return %c0_i32, %c0_i32_0 : i32, i32
  }
  func.func @transform_7(%arg0: i32) -> (i32, i32) {
    %c0_i32 = arith.constant 0 : i32
    %c0_i32_0 = arith.constant 0 : i32
    %c0_i32_1 = arith.constant 0 : i32
    return %c0_i32, %c0_i32_0 : i32, i32
  }
  func.func @transform_8(%arg0: i32) -> (i32, i32) {
    %c0_i32 = arith.constant 0 : i32
    %c0_i32_0 = arith.constant 0 : i32
    %c0_i32_1 = arith.constant 0 : i32
    return %c0_i32, %c0_i32_0 : i32, i32
  }
  func.func @transform_9(%arg0: i32) -> (i32, i32) {
    %c0_i32 = arith.constant 0 : i32
    %c0_i32_0 = arith.constant 0 : i32
    return %arg0, %c0_i32 : i32, i32
  }
}

</mosaic_0001>

<bundles_post_ra>
// kernel: tpu_custom_call.1
= control target key start
LH: loop header
LB: loop body
LE: loop exit
PB: predicated region body
PF: predicated region fallthrough
CT: control target
= control target key end

     0   :  { %vm62_vm0 = vcmask 64512   ;;  %v695_v3 = vmov 0   ;;  %vm208_vm2 = vcmask 130048   ;;  %v696_v57 = vmov 0.0|0.0   ;;  %s948_s0 = inlined_call_operand.vmem [shape: f32[128,8], index: 0, kind: input, shape index: {}]   ;;  %s949_s1 = inlined_call_operand.vmem [shape: f32[16,8], index: 1, kind: input, shape index: {}]   ;;  %s950_s2 = inlined_call_operand.vmem [shape: f32[16,1], index: 2, kind: input, shape index: {}]   ;;  %s951_s6 = inlined_call_operand.vmem [shape: f32[16,1], index: 6, kind: input, shape index: {}]   ;;  %s952_s8 = inlined_call_operand.vmem [shape: f32[8,1], index: 8, kind: input, shape index: {}]   ;;  %s953_s3 = inlined_call_operand.vmem [shape: f32[16,16], index: 3, kind: input, shape index: {}]   ;;  %s954_s4 = inlined_call_operand.vmem [shape: f32[16,1], index: 4, kind: input, shape index: {}]   ;;  %s955_s5 = inlined_call_operand.vmem [shape: f32[16,16], index: 5, kind: input, shape index: {}]   ;;  %s956_s7 = inlined_call_operand.vmem [shape: f32[8,16], index: 7, kind: input, shape index: {}]   ;;  %s957_s9 = inlined_call_operand.vmem [shape: f32[128,4], index: 9, kind: output, shape index: {}]  }
   0x1   :  { %v34_v0 = vld [vmem:[%s948_s0] sm:$0xff]  ;;  %v35_v1 = vld [vmem:[%s948_s0 + $0x8] sm:$0xff]  ;;  %vm757_vm1 = vmpackc.low %vm62_vm0, %vm62_vm0  ;;  %693 = vset.pattern.permute.xlu0 %v695_v3  ;;  %694 = vset.pattern.permute.xlu1 %v695_v3  ;;  %vm697_vm3 = vmmov 0   ;;  %v698_v58 = vmov 0.0   ;;  %vm501_vm4 = vcmask 31744  }
   0x2   :  { %v630_v4 = vpack.c.bf16 %v35_v1, %v34_v0  ;;  %v36_v5 = vld [vmem:[%s948_s0 + $0x10] sm:$0xff]  ;;  %v37_v6 = vld [vmem:[%s948_s0 + $0x18] sm:$0xff]  ;;  %v32_v8 = vld [vmem:[%s949_s1] sm:$0xff] }
   0x3   :  { %v636_v7 = vpack.c.bf16 %v37_v6, %v36_v5  ;;  %v38_v9 = vld [vmem:[%s948_s0 + $0x20] sm:$0xff]  ;;  %v39_v10 = vld [vmem:[%s948_s0 + $0x28] sm:$0xff]  ;;  %606 = vmatprep.mubr.msk.f32.mxu0 %vm62_vm0, %v32_v8  ;;  %v40_v15 = vld [vmem:[%s948_s0 + $0x30] sm:$0xff] }
   0x4   :  { %632 = vmatprep.subr.msk.bf16.mxu0 %vm757_vm1, %v630_v4  ;;  %v50_v11 = vld [vmem:[%s950_s2] sm:$0xff]  ;;  %v51_v12 = vld [vmem:[%s950_s2 + $0x8] sm:$0xff]  ;;  %v642_v13 = vpack.c.bf16 %v39_v10, %v38_v9  ;;  %v41_v16 = vld [vmem:[%s948_s0 + $0x38] sm:$0xff] }
   0x5   :  { %635 = vmatpush3.bf16.xpose.msk.msra.mxu0 %vm757_vm1, %v630_v4  ;;  %54 = vperm.xlu0 %693, %v50_v11   ;;  %v294_v14 = vld [vmem:[%s951_s6] sm:$0xff]  ;;  %v648_v18 = vpack.c.bf16 %v41_v16, %v40_v15  ;;  %v43_v20 = vld [vmem:[%s948_s0 + $0x48] sm:$0xff]  ;;  %v44_v22 = vld [vmem:[%s948_s0 + $0x50] sm:$0xff] }
   0x6   :  { %638 = vmatprep.subr.msk.bf16.mxu0 %vm757_vm1, %v636_v7  ;;  %v390_v17 = vld [vmem:[%s952_s8] sm:$0xff]  ;;  %v45_v23 = vld [vmem:[%s948_s0 + $0x58] sm:$0xff]  ;;  %v47_v26 = vld [vmem:[%s948_s0 + $0x68] sm:$0xff] }
   0x7   :  { %v42_v19 = vld [vmem:[%s948_s0 + $0x40] sm:$0xff]  ;;  %v660_v24 = vpack.c.bf16 %v45_v23, %v44_v22  ;;  %v48_v28 = vld [vmem:[%s948_s0 + $0x70] sm:$0xff]  ;;  %v49_v29 = vld [vmem:[%s948_s0 + $0x78] sm:$0xff] }
   0x8   :  { %v654_v21 = vpack.c.bf16 %v43_v20, %v42_v19  ;;  %v46_v25 = vld [vmem:[%s948_s0 + $0x60] sm:$0xff]  ;;  %v672_v30 = vpack.c.bf16 %v49_v29, %v48_v28  ;;  %v33_v31 = vld [vmem:[%s949_s1 + $0x8] sm:$0xff] }
   0x9   :  { %59 = vperm.xlu0 %693, %v51_v12   ;;  %v666_v27 = vpack.c.bf16 %v47_v26, %v46_v25  ;;  %v194_v32 = vld [vmem:[%s953_s3] sm:$0xff]  ;;  %v197_v34 = vld [vmem:[%s954_s4 + $0x8] sm:$0xff] }
   0xa   :  { %613 = vmatprep.mubr.msk.f32.mxu1 %vm208_vm2, %v194_v32  ;;  %v196_v33 = vld [vmem:[%s954_s4] sm:$0xff]  ;;  %v295_v35 = vld [vmem:[%s951_s6 + $0x8] sm:$0xff] }
   0xb   :  { %200 = vperm.xlu1 %694, %v196_v33   ;;  %v195_v45 = vld [vmem:[%s953_s3 + $0x8] sm:$0xff]  ;;  %v292_v46 = vld [vmem:[%s955_s5] sm:$0xff] }
   0xc   :  { %v293_v56 = vld [vmem:[%s955_s5 + $0x8] sm:$0xff]  ;;  %v389_v4 = vld [vmem:[%s956_s7] sm:$0xff] }
   0xd   :  { %641 = vmatpush3.bf16.xpose.msk.msra.mxu0 %vm757_vm1, %v636_v7  ;;  %298 = vperm.xlu0 %693, %v294_v14  }
   0xe   :  { %644 = vmatprep.subr.msk.bf16.mxu0 %vm757_vm1, %v642_v13 }
   0xf   :  { %205 = vperm.xlu1 %694, %v197_v34  }
  0x11   :  { %393 = vperm.xlu0 %693, %v390_v17  }
  0x13   :  { %303 = vperm.xlu1 %694, %v295_v35  }
  0x15   :  { %647 = vmatpush3.bf16.xpose.msk.msra.mxu0 %vm757_vm1, %v642_v13 }
  0x16   :  { %650 = vmatprep.subr.msk.bf16.mxu0 %vm757_vm1, %v648_v18 }
  0x1d   :  { %653 = vmatpush3.bf16.xpose.msk.msra.mxu0 %vm757_vm1, %v648_v18 }
  0x1e   :  { %656 = vmatprep.subr.msk.bf16.mxu0 %vm757_vm1, %v654_v21 }
  0x25   :  { %659 = vmatpush3.bf16.xpose.msk.msra.mxu0 %vm757_vm1, %v654_v21 }
  0x26   :  { %662 = vmatprep.subr.msk.bf16.mxu0 %vm757_vm1, %v660_v24 }
  0x2d   :  { %665 = vmatpush3.bf16.xpose.msk.msra.mxu0 %vm757_vm1, %v660_v24 }
  0x2e   :  { %668 = vmatprep.subr.msk.bf16.mxu0 %vm757_vm1, %v666_v27 }
  0x35   :  { %671 = vmatpush3.bf16.xpose.msk.msra.mxu0 %vm757_vm1, %v666_v27 }
  0x36   :  { %674 = vmatprep.subr.msk.bf16.mxu0 %vm757_vm1, %v672_v30 }
  0x3d   :  { %677 = vmatpush3.bf16.xpose.msk.msra.mxu0 %vm757_vm1, %v672_v30 }
  0x44   :  { %607 = vmatmul.mubr.msk.f32.vlgmr.msra.gmra.mrb[0].mxu0 %vm62_vm0, %v33_v31 }
  0x84   :  { %v55_v36 = vpop.permute.xlu0 %54 }
  0x88   :  { %v60_v37 = vpop.permute.xlu0 %59 }
  0x8a   :  { %v201_v47 = vpop.permute.xlu1 %200 }
  0x8c   :  { %v299_v61 = vpop.permute.xlu0 %298 }
  0x8e   :  { %v206_v48 = vpop.permute.xlu1 %205 }
  0x90   :  { %v394_v5 = vpop.permute.xlu0 %393 }
  0x92   :  { %v304_v59 = vpop.permute.xlu1 %303 }
 0x117   :  { %v608_v38 = vpop.f32.mrb[0].mxu0 }
 0x118   :  { %v189_v39 = vadd.f32 %v608_v38, %v60_v37  ;;  %v183_v40 = vpop.f32.mrb[1].mxu0 }
 0x119   :  { %v184_v41 = vadd.f32 %v183_v40, %v55_v36 }
 0x11a   :  { %v193_v42 = vmax.f32 %v189_v39, 0.0 }
 0x11b   :  { %v192_v43 = vmax.f32 %v184_v41, 0.0 }
 0x11d   :  { %v678_v44 = vpack.c.bf16 %v193_v42, %v192_v43 }
 0x11f   :  { %679 = vmatprep.subr.bf16.mxu1 %v678_v44 }
 0x120   :  { %681 = vmatpush3.bf16.msra.mxu1 %v678_v44 }
 0x123   :  { %614 = vmatmul.mubr.msk.f32.vlgmr.msra.gmra.mrb[0].mxu1 %vm208_vm2, %v195_v45 }
 0x124   :  { %620 = vmatprep.mubr.msk.f32.mxu1 %vm208_vm2, %v292_v46 }
 0x1f6   :  { %v615_v49 = vpop.f32.mrb[0].mxu1 }
 0x1f7   :  { %v287_v50 = vadd.f32 %v615_v49, %v206_v48  ;;  %v281_v51 = vpop.f32.mrb[1].mxu1 }
 0x1f8   :  { %v282_v52 = vadd.f32 %v281_v51, %v201_v47 }
 0x1f9   :  { %v291_v53 = vmax.f32 %v287_v50, 0.0 }
 0x1fa   :  { %v290_v54 = vmax.f32 %v282_v52, 0.0 }
 0x1fc   :  { %v682_v55 = vpack.c.bf16 %v291_v53, %v290_v54 }
 0x1fe   :  { %683 = vmatprep.subr.bf16.mxu1 %v682_v55 }
 0x1ff   :  { %685 = vmatpush3.bf16.msra.mxu1 %v682_v55 }
 0x200   :  { %686 = vmatprep.subr.bf16.mxu1 %v696_v57 }
 0x202   :  { %621 = vmatmul.mubr.msk.f32.vlgmr.msra.gmra.mrb[2].mxu1 %vm208_vm2, %v293_v56 }
 0x203   :  { %627 = vmatprep.mubr.msk.f32.mxu1 %vm697_vm3, %v698_v58 }
 0x2d5   :  { %v622_v60 = vpop.f32.mrb[2].mxu1 }
 0x2d6   :  { %v384_v62 = vadd.f32 %v622_v60, %v304_v59  ;;  %v378_v63 = vpop.f32.mrb[3].mxu1 }
 0x2d7   :  { %v379_v0 = vadd.f32 %v378_v63, %v299_v61 }
 0x2d8   :  { %v388_v1 = vmax.f32 %v384_v62, 0.0 }
 0x2d9   :  { %v387_v2 = vmax.f32 %v379_v0, 0.0 }
 0x2db   :  { %v687_v3 = vpack.c.bf16 %v388_v1, %v387_v2 }
 0x2dd   :  { %688 = vmatpush3.bf16.msra.mxu1 %v687_v3 }
 0x2e0   :  { %628 = vmatmul.mubr.msk.f32.vlgmr.msra.gmra.mrb[4].mxu1 %vm208_vm2, %v389_v4 }
 0x3b3   :  { %v465_v6 = vpop.f32.mrb[4].mxu1 }
 0x3b4   :  { %v466_v7 = vadd.f32 %v465_v6, %v394_v5  ;;  %v629_v8 = vpop.f32.mrb[5].mxu1 }
 0x3b6   :  { %469 = vxpose.xlu1.b32.start.end [1/1] (short) %v466_v7, 128 }
 0x436   :  { %v485_v9 = vpop.trf.xlu1 }
 0x437   :  { %502 = vst.msk [vmem:[%s957_s9] sm:$0xff] %vm501_vm4, %v485_v9 }
 0x43a   :  { %v486_v10 = vpop.trf.xlu1 }
 0x43b   :  { %503 = vst.msk [vmem:[%s957_s9 + $0x8] sm:$0xff] %vm501_vm4, %v486_v10 }
 0x43e   :  { %v487_v11 = vpop.trf.xlu1 }
 0x43f   :  { %504 = vst.msk [vmem:[%s957_s9 + $0x10] sm:$0xff] %vm501_vm4, %v487_v11 }
 0x442   :  { %v488_v12 = vpop.trf.xlu1 }
 0x443   :  { %505 = vst.msk [vmem:[%s957_s9 + $0x18] sm:$0xff] %vm501_vm4, %v488_v12 }
 0x446   :  { %v489_v13 = vpop.trf.xlu1 }
 0x447   :  { %506 = vst.msk [vmem:[%s957_s9 + $0x20] sm:$0xff] %vm501_vm4, %v489_v13 }
 0x44a   :  { %v490_v14 = vpop.trf.xlu1 }
 0x44b   :  { %507 = vst.msk [vmem:[%s957_s9 + $0x28] sm:$0xff] %vm501_vm4, %v490_v14 }
 0x44e   :  { %v491_v15 = vpop.trf.xlu1 }
 0x44f   :  { %508 = vst.msk [vmem:[%s957_s9 + $0x30] sm:$0xff] %vm501_vm4, %v491_v15 }
 0x452   :  { %v492_v16 = vpop.trf.xlu1 }
 0x453   :  { %509 = vst.msk [vmem:[%s957_s9 + $0x38] sm:$0xff] %vm501_vm4, %v492_v16 }
 0x456   :  { %v493_v17 = vpop.trf.xlu1 }
 0x457   :  { %510 = vst.msk [vmem:[%s957_s9 + $0x40] sm:$0xff] %vm501_vm4, %v493_v17 }
 0x45a   :  { %v494_v18 = vpop.trf.xlu1 }
 0x45b   :  { %511 = vst.msk [vmem:[%s957_s9 + $0x48] sm:$0xff] %vm501_vm4, %v494_v18 }
 0x45e   :  { %v495_v19 = vpop.trf.xlu1 }
 0x45f   :  { %512 = vst.msk [vmem:[%s957_s9 + $0x50] sm:$0xff] %vm501_vm4, %v495_v19 }
 0x462   :  { %v496_v20 = vpop.trf.xlu1 }
 0x463   :  { %513 = vst.msk [vmem:[%s957_s9 + $0x58] sm:$0xff] %vm501_vm4, %v496_v20 }
 0x466   :  { %v497_v21 = vpop.trf.xlu1 }
 0x467   :  { %514 = vst.msk [vmem:[%s957_s9 + $0x60] sm:$0xff] %vm501_vm4, %v497_v21 }
 0x46a   :  { %v498_v22 = vpop.trf.xlu1 }
 0x46b   :  { %515 = vst.msk [vmem:[%s957_s9 + $0x68] sm:$0xff] %vm501_vm4, %v498_v22 }
 0x46e   :  { %v499_v23 = vpop.trf.xlu1 }
 0x46f   :  { %516 = vst.msk [vmem:[%s957_s9 + $0x70] sm:$0xff] %vm501_vm4, %v499_v23 }
 0x472   :  { %v500_v24 = vpop.trf.xlu1 }
 0x473   :  { %517 = vst.msk [vmem:[%s957_s9 + $0x78] sm:$0xff] %vm501_vm4, %v500_v24 }

</bundles_post_ra>
